<compile_context>
chip_gen: v7x
topology: tpu7x:2x2x1
jax: 0.10.0
libtpu: 0.0.40
codegen_flags: <defaults>
</compile_context>

<pallas_src>
import jax
import jax.numpy as jnp
from jax.experimental import pallas as pl
from jax.experimental.pallas import tpu as pltpu


# ----------------------------- kernel -------------------------------------- #

def _drop_path_kernel(x_ref, s_ref, o_ref):
    # x_ref: (TN, D); s_ref: (TN, 1) already in x.dtype -> broadcast over D.
    # Pure streaming multiply in the input dtype (no f32 round-trip).
    o_ref[...] = x_ref[...] * s_ref[...]


# ----------------------------- policy --------------------------------------- #

_SMALL_INPUT_BYTES = 1 << 20       # below this, a plain XLA multiply wins
_VMEM_HEADROOM_BYTES = 2 << 20     # slack inside the scoped VMEM limit


def _chip_policy():
    """Returns (target_block_bytes, vmem_limit_bytes, num_tensorcores)."""
    target = 4 << 20        # v5e / v6e: ~4 MiB blocks sit at the HBM-roofline knee
    vmem_limit = 64 << 20   # cheap headroom on the 128 MiB parts
    cores = 1
    try:
        info = pltpu.get_tpu_info()
        vmem_cap = int(getattr(info, "vmem_capacity_bytes", 128 << 20))
        if vmem_cap <= (64 << 20):
            # v7x-like: halved VMEM, 2 TCs/chip, ~3.2 TB/s HBM -> bigger blocks,
            # tighter scoped limit, and shard the grid across both cores.
            target = 5 << 20
            vmem_limit = 32 << 20
            cores = 2
    except Exception:
        # Conservative fallback that is safe on every generation.
        target = 4 << 20
        vmem_limit = 32 << 20
        cores = 2
    return target, vmem_limit, cores


def _choose_block_rows(n_rows, d, itemsize, target_bytes, vmem_limit, cores,
                       override=None):
    # Sublane packing per dtype width: f32 -> 8, bf16 -> 16, int8/fp8 -> 32.
    sub = {1: 32, 2: 16, 4: 8}.get(int(itemsize), 8)
    if override is not None:
        tn = int(min(override, n_rows))
    else:
        row_bytes = max(int(d) * int(itemsize), 1)
        # Double-buffered VMEM per row: x-in + out tiles plus the lane-padded
        # (tn, 1) scale tile (occupies a full 128-lane row per node).
        per_row_vmem = 2 * (2 * row_bytes + 128 * int(itemsize))
        tn = target_bytes // row_bytes
        tn = min(tn, max(1, (vmem_limit - _VMEM_HEADROOM_BYTES) // per_row_vmem))
        if cores > 1:
            # Guarantee >= 2 grid steps per TensorCore so a "parallel" grid
            # actually shards across both cores on v7x.
            tn = min(tn, pl.cdiv(n_rows, 2 * cores))
        tn = max(int(tn), 1)
    if tn >= n_rows:
        return n_rows                        # single full-extent block
    return max(sub, (tn // sub) * sub)       # sublane-aligned for the dtype


# ----------------------------- wrapper -------------------------------------- #

def _graph_drop_path_pallas(x2, scale, *, block_rows=None):
    """out[n, d] = x2[n, d] * scale[n, 0] with x2:(N, D), scale:(N, 1) x.dtype."""
    N, D = x2.shape
    target, vmem_limit, cores = _chip_policy()
    tn = _choose_block_rows(N, D, x2.dtype.itemsize, target, vmem_limit, cores,
                            override=block_rows)
    return pl.pallas_call(
        _drop_path_kernel,
        out_shape=jax.ShapeDtypeStruct((N, D), x2.dtype),
        grid_spec=pl.GridSpec(
            grid=(pl.cdiv(N, tn),),
            in_specs=[
                pl.BlockSpec((tn, D), lambda i: (i, 0)),
                pl.BlockSpec((tn, 1), lambda i: (i, 0)),
            ],
            out_specs=pl.BlockSpec((tn, D), lambda i: (i, 0)),
        ),
        compiler_params=pltpu.CompilerParams(
            dimension_semantics=("parallel",),
            vmem_limit_bytes=vmem_limit,
        ),
    )(x2, scale)


class GraphDropPath:
    """JAX/Pallas port of the PyTorch GraphDropPath (forward pass only)."""

    def __init__(self, drop_prob=None):
        self.drop_prob = drop_prob

    def __call__(self, x, batch, key, *, num_graphs=None, training=True,
                 block_rows=None, use_fast_path=True):
        if (not training) or (not self.drop_prob):
            return x
        if num_graphs is None:
            # Eager-only fallback; pass num_graphs statically when jitting
            # (avoids a device->host sync / ConcretizationTypeError).
            num_graphs = int(batch.max()) + 1

        keep_prob = 1.0 - float(self.drop_prob)
        # torch: floor(keep_prob + U[0,1))  ==  Bernoulli(keep_prob)
        keep = jax.random.bernoulli(key, keep_prob, (num_graphs,))
        drop = keep.astype(jnp.float32) / jnp.float32(keep_prob)  # {0, 1/keep_prob}

        # Per-graph -> per-node gather in the wrapper (tiny XLA op); cast once
        # to x.dtype so the kernel multiplies natively.
        # NOTE: out-of-range batch indices are clamped by the JAX gather, not
        # an error as in torch -- ensure num_graphs is correct.
        scale = drop[batch.astype(jnp.int32)].astype(x.dtype).reshape(-1, 1)

        N = x.shape[0]
        x2 = x.reshape(N, -1)                                      # lane-dense
        total_bytes = x2.size * x2.dtype.itemsize
        if use_fast_path and block_rows is None and total_bytes < _SMALL_INPUT_BYTES:
            # Tiny input: pallas_call launch overhead dominates and XLA can
            # fuse this multiply into neighboring ops.
            return (x2 * scale).reshape(x.shape)
        out2 = _graph_drop_path_pallas(x2, scale, block_rows=block_rows)
        return out2.reshape(x.shape)


# ------------------------------- main --------------------------------------- #

if __name__ == "__main__":
    key = jax.random.PRNGKey(0)
    k_x, k_drop, k_x2, k_drop2, k_x3, k_drop3 = jax.random.split(key, 6)

    # Small shapes consistent with the module: N nodes, (lmax+1)^2 = 9
    # spherical-harmonic components, C channels; 2 graphs.
    N, L, C = 16, 9, 128
    x = jax.random.normal(k_x, (N, L, C), dtype=jnp.float32)
    batch = jnp.repeat(jnp.arange(2, dtype=jnp.int32), N // 2)     # 2 graphs

    mod = GraphDropPath(drop_prob=0.5)
    keep_prob = 0.5

    # --- Pallas path (fast path disabled so the kernel is exercised) ---
    out = mod(x, batch, k_drop, num_graphs=2, training=True, use_fast_path=False)
    out = jax.block_until_ready(out)

    keep_ref = jax.random.bernoulli(k_drop, keep_prob, (2,))
    drop_ref = keep_ref.astype(jnp.float32) / jnp.float32(keep_prob)
    ref = x * drop_ref[batch][:, None, None]
    assert out.shape == x.shape and out.dtype == x.dtype
    assert jnp.allclose(out, ref, atol=1e-6, rtol=1e-6)

    # --- small-input XLA fast path gives the same answer ---
    out_fast = jax.block_until_ready(mod(x, batch, k_drop, num_graphs=2,
                                         training=True))
    assert jnp.allclose(out_fast, ref, atol=1e-6, rtol=1e-6)

    # --- multi-block / ragged-grid Pallas path (N not a multiple of tn) ---
    N2 = 20
    x2 = jax.random.normal(k_x2, (N2, L, C), dtype=jnp.float32)
    batch2 = jnp.concatenate([jnp.zeros(7, jnp.int32),
                              jnp.ones(6, jnp.int32),
                              jnp.full((7,), 2, jnp.int32)])
    out2 = mod(x2, batch2, k_drop2, num_graphs=3, training=True,
               block_rows=8, use_fast_path=False)
    out2 = jax.block_until_ready(out2)

    keep_ref2 = jax.random.bernoulli(k_drop2, keep_prob, (3,))
    drop_ref2 = keep_ref2.astype(jnp.float32) / jnp.float32(keep_prob)
    ref2 = x2 * drop_ref2[batch2][:, None, None]
    assert jnp.allclose(out2, ref2, atol=1e-6, rtol=1e-6)

    # --- bf16 path (multiply in-dtype, 16-row sublane alignment) ---
    N3 = 32
    x3 = jax.random.normal(k_x3, (N3, L, C), dtype=jnp.float32).astype(jnp.bfloat16)
    batch3 = jnp.repeat(jnp.arange(2, dtype=jnp.int32), N3 // 2)
    out3 = mod(x3, batch3, k_drop3, num_graphs=2, training=True,
               block_rows=16, use_fast_path=False)
    out3 = jax.block_until_ready(out3)

    keep_ref3 = jax.random.bernoulli(k_drop3, keep_prob, (2,))
    drop_ref3 = (keep_ref3.astype(jnp.float32) /
                 jnp.float32(keep_prob)).astype(jnp.bfloat16)
    ref3 = x3 * drop_ref3[batch3][:, None, None]
    assert out3.dtype == jnp.bfloat16
    assert jnp.allclose(out3.astype(jnp.float32), ref3.astype(jnp.float32),
                        atol=0.0, rtol=0.0)

    # --- eval / drop_prob falsy path returns x unchanged ---
    assert mod(x, batch, k_drop, num_graphs=2, training=False) is x
    assert GraphDropPath(drop_prob=0.0)(x, batch, k_drop, num_graphs=2,
                                        training=True) is x

    print("KERNEL_OK")
</pallas_src>

<mosaic_0001>
module attributes {stable_mosaic.version = 11 : i64} {
  func.func @_drop_path_kernel(%arg0: i32, %arg1: memref<8x1152xf32, #tpu.memory_space<vmem>>, %arg2: memref<8x1xf32, #tpu.memory_space<vmem>>, %arg3: memref<8x1152xf32, #tpu.memory_space<vmem>>) attributes {dimension_semantics = [#tpu.dimension_semantics<parallel>], iteration_bounds = array<i64: 2>, scalar_prefetch = 0 : i64, scratch_operands = 0 : i64, tpu.core_type = #tpu.core_type<tc>, window_params = [{transform_indices = @transform_0, window_bounds = array<i64: 8, 1152>}, {transform_indices = @transform_1, window_bounds = array<i64: 8, 1>}, {transform_indices = @transform_2, window_bounds = array<i64: 8, 1152>}]} {
    %c0 = arith.constant 0 : index
    %c0_0 = arith.constant 0 : index
    %0 = vector.load %arg1[%c0, %c0_0] : memref<8x1152xf32, #tpu.memory_space<vmem>>, vector<8x1152xf32>
    %c0_1 = arith.constant 0 : index
    %c0_2 = arith.constant 0 : index
    %1 = vector.load %arg2[%c0_1, %c0_2] : memref<8x1xf32, #tpu.memory_space<vmem>>, vector<8x1xf32>
    %2 = vector.broadcast %1 : vector<8x1xf32> to vector<8x1152xf32>
    %3 = arith.mulf %0, %2 : vector<8x1152xf32>
    %c0_3 = arith.constant 0 : index
    %c0_4 = arith.constant 0 : index
    %4 = vector.load %arg3[%c0_3, %c0_4] : memref<8x1152xf32, #tpu.memory_space<vmem>>, vector<8x1152xf32>
    tpu.vector_store %arg3[%c0_3, %c0_4], %3 {strides = array<i32>} : memref<8x1152xf32, #tpu.memory_space<vmem>>, vector<8x1152xf32>,
    return
  }
  func.func @transform_0(%arg0: i32) -> (i32, i32) {
    %c0_i32 = arith.constant 0 : i32
    %c0_i32_0 = arith.constant 0 : i32
    return %arg0, %c0_i32 : i32, i32
  }
  func.func @transform_1(%arg0: i32) -> (i32, i32) {
    %c0_i32 = arith.constant 0 : i32
    %c0_i32_0 = arith.constant 0 : i32
    return %arg0, %c0_i32 : i32, i32
  }
  func.func @transform_2(%arg0: i32) -> (i32, i32) {
    %c0_i32 = arith.constant 0 : i32
    %c0_i32_0 = arith.constant 0 : i32
    return %arg0, %c0_i32 : i32, i32
  }
}

</mosaic_0001>

<bundles_post_ra>
// kernel: tpu_custom_call.1
= control target key start
LH: loop header
LB: loop body
LE: loop exit
PB: predicated region body
PF: predicated region fallthrough
CT: control target
= control target key end

     0   :  { %7 = vsyncpa [#allocation3], 0  ;;  %s644_s0 = inlined_call_operand.hbm [shape: f32[16,1152], index: 0, kind: input, shape index: {}]   ;;  %s645_s1 = inlined_call_operand.vmem [shape: f32[16,1], index: 1, kind: input, shape index: {}]   ;;  %s646_s2 = inlined_call_operand.hbm [shape: f32[16,1152], index: 2, kind: output, shape index: {}]  }
   0x1   :  { %9 = vsyncpa [#allocation3 + $0x1], 0 }
   0x2   :  { %10 = vsyncpa [#allocation4], 0 }
   0x3   :  { %12 = vsyncpa [#allocation4 + $0x1], 0  ;;  %s484_s9 = smov 0   ;;  %s486_s10 = smov 0  }
   0x4   :  { %s488_s11 = smov 0   ;;  %s490_s12 = smov 0  }
   0x5 LB: > { %s505_s13 = sadd.s32 4294967295, %s464_s12   ;;  %s307_s14 = sadd.s32 4294967294, %s464_s12   ;;  %s464_s12 = sphi %s490_s12, %s660_s12   ;;  %s460_s11 = sphi %s488_s11, %s659_s11   ;;  %s456_s10 = sphi %s486_s10, %s658_s10   ;;  %s452_s9 = sphi %s484_s9, %s657_s9  }
   0x6   : > { %s509_s15 = sadd.s32 1, %s464_s12   ;;  %s25_s16 = sadd.s32 1, %s460_s11 }
   0x7   : > { %s22_s17 = ssub.s32 %s464_s12, %s509_s15  ;;  %p32_p0 = scmp.ne.s32.totalorder %s460_s11, %s456_s10 }
   0x8   : > { %p23_p1 = scmp.eq.s32.totalorder %s22_s17, 0  ;;  %p33_p2 = scmp.eq.s32.totalorder %s464_s12, 0 }
   0x9   : > { %p38_p3 = scmp.ne.s32.totalorder %s456_s10, %s452_s9  ;;  %p39_p4 = scmp.eq.s32.totalorder %s505_s13, 0 }
   0xa   : > { %s521_s18 = scalar_select %p23_p1, %s460_s11, %s25_s16  }
   0xb   : > { %p34_p5 = por %p33_p2, %p32_p0  ;;  %p523_p6 = por %p39_p4, %p38_p3 }
   0xc   : > { %p88_p7 = scmp.eq.s32.totalorder %s505_s13, 1  ;;  %p94_p8 = scmp.eq.s32.totalorder %s307_s14, 1 }
   0xd   : > { %p332_p10 = scmp.lt.s32.totalorder %s464_s12, 2  ;;  %s114_s22 = sand.u32 1, %s460_s11  }
   0xe   : > { %p530_p11 = por %p88_p7, %p32_p0  ;;  %p534_p12 = por %p94_p8, %p38_p3 }
   0xf   : > { %s317_s23 = smul.u32 1152, %s464_s12  ;;  %p545_p13 = pnand %p332_p10, %p34_p5 }
  0x10   : > { %s649_s20 = scalar_select %p530_p11, 1, 0 }
  0x11   : > { %s650_s21 = scalar_select %p534_p12, 1, 0 }
  0x12   : > { %s316_s24 = smul.u32 72, %s114_s22  ;;  %s543_s27 = scalar_lea.hbm %s644_s0, %s317_s23 }
  0x13   : > { %s115_s3 = scalar_lea.sflag [#allocation3], %s114_s22  ;;  %s368_s4 = scalar_lea.hbm %s543_s27, 1152 }
  0x14   : > { %s118_s29 = scalar_lea.vmem [#allocation2], %s316_s24  ;;  %p369_p2 = scmp.ne.s32.totalorder %s543_s27, %s368_s4 }
  0x15   : > { %s126_s30 = sshll.u32 %s118_s29, 4  ;;  %p370_p3 = pneg %p545_p13  ;;  %s550_s30 = int_to_ptr.vmem [resolvable:$true] %s126_s30 }
  0x16   : > { %s373_s7 = scalar_lea.hbm %s644_s0, 2304  ;;  %p374_p7 = scmp.lt.u32.totalorder %s543_s27, %s644_s0 }
  0x17   : > { %p371_p4 = pnand %p370_p3, %p369_p2  ;;  %p375_p8 = scmp.lt.u32.totalorder %s373_s7, %s368_s4 }
  0x18   : > { %p377_p9 = scmp.lt.u32.totalorder %s368_s4, %s543_s27 }
  0x19   : > { %p372_p5 = pneg %p371_p4  ;;  %p376_p10 = por %p375_p8, %p374_p7 }
  0x1b   : > { %p378_p0 = por %p377_p9, %p376_p10 }
  0x1d   : > { %p379_p1 = pnand %p378_p0, %p372_p5 }
  0x1f   : > { %382 = shalt.err (!%p379_p1)
}
  0x20   : > { %s383_s16 = scalar_lea.vmem %s550_s30, 1152  ;;  %s466_s17 = smov [#allocation2]  }
  0x21   : > { %p384_p2 = scmp.ne.s32.totalorder %s550_s30, %s383_s16  ;;  %s388_s22 = sshll.u32 %s466_s17, 4  ;;  %s389_s22 = int_to_ptr.vmem [resolvable:$false] %s388_s22 }
  0x22   : > { %s390_s23 = scalar_lea.vmem %s389_s22, 2304  ;;  %p391_p11 = scmp.lt.s32.totalorder %s550_s30, %s389_s22 }
  0x23   : > { %p386_p4 = pnand %p384_p2, %p370_p3  ;;  %p392_p7 = scmp.lt.s32.totalorder %s390_s23, %s383_s16 }
  0x25   : > { %p387_p12 = pneg %p386_p4  ;;  %p393_p8 = por %p392_p7, %p391_p11 }
  0x27   : > { %p394_p9 = pnand %p393_p8, %p387_p12 }
  0x29   : > { %397 = shalt.err (!%p394_p9)
}
  0x2a   : > { %327 = dma.hbm_to_vmem [thread:$0]  (!%p545_p13), %s543_s27, 1152, %s550_s30, %s115_s3  }
  0x2b   : > { %p652_p0 = scmp.lt.s32.totalorder %s464_s12, 3  ;;  %p653_p1 = scmp.ge.s32.totalorder %s464_s12, 1 }
  0x2d   : > { %p139_p3 = pnand %p653_p1, %p652_p0 }
  0x2e   : > { %s583_s24 = sand.u32 (!%p139_p3), 1, %s456_s10  }
  0x2f   : > { %142 = sbr.rel (%p139_p3) target bundleno = 210 (0xd2), region = 28  ;;  %s145_s26 = scalar_lea.sflag (!%p139_p3), [#allocation3], %s583_s24 }
  0x30   : > { %s318_s25 = smul.u32 (!%p139_p3), 72, %s583_s24 }
  0x32   : > { %s148_s29 = scalar_lea.vmem (!%p139_p3), [#allocation2], %s318_s25 }
  0x36   : > { %443 = dma.done.wait (%p523_p6), %s145_s26, 1152  }
  0x37   : > { %445 = vsyncadd (%p523_p6), %s145_s26, 4294966144  ;;  %p173_p11 = scmp.lt.s32.totalorder %s505_s13, 1  ;;  %v467_v0 = vmov 0   ;;  %v177_v2 = vld [vmem:[%s148_s29] sm:$0xff]  ;;  %v178_v3 = vld [vmem:[%s148_s29 + $0x8] sm:$0xff]  ;;  %s319_s19 = smul.u32 1152, %s505_s13 }
  0x38   : > { %367 = vset.pattern.permute.xlu0 %v467_v0  ;;  %v179_v4 = vld [vmem:[%s148_s29 + $0x10] sm:$0xff]  ;;  %v180_v5 = vld [vmem:[%s148_s29 + $0x18] sm:$0xff]  ;;  %v181_v6 = vld [vmem:[%s148_s29 + $0x20] sm:$0xff]  ;;  %s172_s5 = scalar_lea.vmem [#allocation5], %s318_s25  ;;  %s211_s14 = scalar_lea.sflag [#allocation4], %s583_s24 }
  0x39   : > { %s174_s27 = scalar_select %p173_p11, %s505_s13, 1  ;;  %v182_v7 = vld [vmem:[%s148_s29 + $0x28] sm:$0xff]  ;;  %v183_v8 = vld [vmem:[%s148_s29 + $0x30] sm:$0xff]  ;;  %v184_v9 = vld [vmem:[%s148_s29 + $0x38] sm:$0xff] }
  0x3a   : > { %v185_v11 = vld [vmem:[%s148_s29 + $0x40] sm:$0xff]  ;;  %s225_s6 = sshll.u32 %s172_s5, 4  ;;  %s600_s8 = scalar_lea.hbm %s646_s2, %s319_s19  ;;  %s602_s6 = int_to_ptr.vmem [resolvable:$true] %s225_s6 }
  0x3b   : > { %s312_s28 = sshll.u32 %s174_s27, 3  ;;  %s398_s16 = scalar_lea.vmem %s602_s6, 1152 }
  0x3c   : > { %s176_s4 = scalar_lea.vmem %s645_s1, %s312_s28  ;;  %p399_p6 = scmp.ne.s32.totalorder %s602_s6, %s398_s16 }
  0x3d   : > { %v186_v1 = vld [vmem:[%s176_s4] sm:$0xff]  ;;  %p654_p12 = scmp.ne.s32.totalorder %s649_s20, 0  ;;  %s468_s17 = smov [#allocation5]  }
  0x3e   : > { %189 = vperm.xlu0 %367, %v186_v1   ;;  %s402_s22 = sshll.u32 %s468_s17, 4  ;;  %s403_s22 = int_to_ptr.vmem [resolvable:$false] %s402_s22 }
  0x3f   : > { %p400_p13 = pnand %p399_p6, %p654_p12  ;;  %s404_s23 = scalar_lea.vmem %s403_s22, 2304 }
  0x40   : > { %p405_p10 = scmp.lt.s32.totalorder %s602_s6, %s403_s22  ;;  %p406_p2 = scmp.lt.s32.totalorder %s404_s23, %s398_s16 }
  0x41   : > { %p401_p5 = pneg %p400_p13 }
  0x42   : > { %p407_p4 = por %p406_p2, %p405_p10 }
  0x44   : > { %p408_p7 = pnand %p407_p4, %p401_p5 }
  0xbd   : > { %v190_v10 = vpop.permute.xlu0 %189 }
  0xbe   : > { %v192_v12 = vmul.f32 %v190_v10, %v177_v2  ;;  %v193_v13 = vmul.f32 %v190_v10, %v178_v3  ;;  %v194_v14 = vmul.f32 %v190_v10, %v179_v4  ;;  %v195_v15 = vmul.f32 %v190_v10, %v180_v5 }
  0xbf   : > { %v196_v16 = vmul.f32 %v190_v10, %v181_v6  ;;  %v197_v17 = vmul.f32 %v190_v10, %v182_v7  ;;  %v198_v18 = vmul.f32 %v190_v10, %v183_v8  ;;  %v199_v19 = vmul.f32 %v190_v10, %v184_v9 }
  0xc0   : > { %v200_v20 = vmul.f32 %v190_v10, %v185_v11  ;;  %201 = vst [vmem:[%s172_s5] sm:$0xff] %v192_v12  ;;  %202 = vst [vmem:[%s172_s5 + $0x8] sm:$0xff] %v193_v13 }
  0xc1   : > { %203 = vst [vmem:[%s172_s5 + $0x10] sm:$0xff] %v194_v14  ;;  %204 = vst [vmem:[%s172_s5 + $0x18] sm:$0xff] %v195_v15 }
  0xc2   : > { %205 = vst [vmem:[%s172_s5 + $0x20] sm:$0xff] %v196_v16  ;;  %206 = vst [vmem:[%s172_s5 + $0x28] sm:$0xff] %v197_v17 }
  0xc3   : > { %207 = vst [vmem:[%s172_s5 + $0x30] sm:$0xff] %v198_v18  ;;  %208 = vst [vmem:[%s172_s5 + $0x38] sm:$0xff] %v199_v19 }
  0xc4   : > { %209 = vst [vmem:[%s172_s5 + $0x40] sm:$0xff] %v200_v20 }
  0xc5   : > { %411 = shalt.err (!%p408_p7)
}
  0xc6   : > { %s412_s24 = scalar_lea.hbm %s600_s8, 1152  ;;  %s416_s29 = scalar_lea.hbm %s646_s2, 2304 }
  0xc7   : > { %p413_p8 = scmp.ne.s32.totalorder %s600_s8, %s412_s24  ;;  %p417_p1 = scmp.lt.u32.totalorder %s600_s8, %s646_s2 }
  0xc8   : > { %p418_p3 = scmp.lt.u32.totalorder %s416_s29, %s412_s24  ;;  %p420_p6 = scmp.lt.u32.totalorder %s412_s24, %s600_s8 }
  0xc9   : > { %p414_p9 = pnand %p413_p8, %p654_p12 }
  0xca   : > { %p419_p11 = por %p418_p3, %p417_p1 }
  0xcb   : > { %p415_p0 = pneg %p414_p9 }
  0xcc   : > { %p421_p13 = por %p420_p6, %p419_p11 }
  0xce   : > { %p422_p5 = pnand %p421_p13, %p415_p0 }
  0xd0   : > { %425 = shalt.err (!%p422_p5)
}
  0xd1   : > { %322 = dma.vmem_to_hbm [thread:$0]  (%p654_p12), %s602_s6, 1152, %s600_s8, %s211_s14  }
  0xd2 PF: > { %s237_s30 = sand.u32 1, %s452_s9   ;;  %p655_p10 = scmp.ne.s32.totalorder %s650_s21, 0 }
  0xd3   : > { %p656_p2 = scmp.ge.s32.totalorder %s464_s12, 2  ;;  %s238_s3 = scalar_lea.sflag [#allocation4], %s237_s30 }
  0xd5   : > { %p329_p4 = pnand %p656_p2, %p655_p10 }
  0xd7   : > { %447 = dma.done.wait (!%p329_p4), %s238_s3, 1152  }
  0xd8   : > { %449 = vsyncadd (!%p329_p4), %s238_s3, 4294966144  ;;  %p15_p7 = scmp.ge.s32.totalorder %s509_s15, 4   ;;  %s657_s9 = smov %s456_s10 }
  0xd9   : > { %s658_s10 = smov %s460_s11  ;;  %s659_s11 = smov %s521_s18 }
  0xda   : > { %s660_s12 = smov %s509_s15  ;;  %17 = sbr.rel (!%p15_p7) target bundleno = 5 (0x5), region = 76 }
  0xe1   :  { %243 = vsyncpa [#allocation3], 1 }
  0xe2   :  { %245 = vsyncpa [#allocation3 + $0x1], 1 }
  0xe3   :  { %246 = vsyncpa [#allocation4], 1 }
  0xe4   :  { %248 = vsyncpa [#allocation4 + $0x1], 1 }

</bundles_post_ra>
